<compile_context>
chip_gen: v5e
topology: v5e:2x2
jax: 0.10.0
libtpu: 0.0.40
codegen_flags: <defaults>
</compile_context>

<pallas_src>
import math

import jax
import jax.numpy as jnp
from jax.experimental import pallas as pl
from jax.experimental.pallas import tpu as pltpu


def data_embedding_kernel(x3_ref, w_ref, pe_ref, o_ref):
    # x3_ref : [b_t, L, 3C]  fused conv input rows (x_prev || x || x_next)
    # w_ref  : [3C, D]       fused conv weight (tap-major)
    # pe_ref : [L, D]        positional encoding (f32), shared over the batch axis
    # o_ref  : [b_t, L, D]   output block
    w = w_ref[...]
    pe = pe_ref[...]
    b_t = o_ref.shape[0]

    @pl.loop(0, b_t)
    def _(b):
        # One MXU pass per batch row: f32 accumulation regardless of operand dtype.
        y = jnp.dot(x3_ref[b], w, preferred_element_type=jnp.float32)   # [L, D] f32
        o_ref[b] = (y + pe).astype(o_ref.dtype)                         # cast only at store


def make_positional_encoding(seq_len, d_model):
    """Standard sin/cos positional encoding, matching PositionalEmbedding."""
    position = jnp.arange(seq_len, dtype=jnp.float32)[:, None]              # [L, 1]
    div_term = jnp.exp(jnp.arange(0, d_model, 2, dtype=jnp.float32)
                       * -(math.log(10000.0) / d_model))                    # [D/2]
    pe = jnp.zeros((seq_len, d_model), dtype=jnp.float32)
    pe = pe.at[:, 0::2].set(jnp.sin(position * div_term))
    pe = pe.at[:, 1::2].set(jnp.cos(position * div_term))
    return pe


def init_token_conv_weight(key, c_in, d_model, kernel_size=3):
    """Kaiming-normal (fan_in, leaky_relu) init for Conv1d weight [D, C, K]."""
    fan_in = c_in * kernel_size
    gain = math.sqrt(2.0)  # leaky_relu with default a=0
    std = gain / math.sqrt(fan_in)
    return jax.random.normal(key, (d_model, c_in, kernel_size), jnp.float32) * std


def _choose_batch_rows(B, L, D, out_itemsize, requested):
    """Pick how many whole batch rows go into one block."""
    if requested is None:
        target = 4 * 1024 * 1024                       # ~4 MiB output block
        b_t = max(1, target // max(1, L * D * out_itemsize))
        if B >= 4:
            b_t = min(b_t, B // 4)                     # keep >= 4 grid steps
    else:
        b_t = requested
    b_t = max(1, min(B, b_t))
    while B % b_t != 0:                                # exact tiling, no ragged block
        b_t -= 1
    if (B // b_t) % 2 == 1 and b_t % 2 == 0:
        b_t //= 2                                      # even grid -> clean v7x 2-TC split
    return b_t


def data_embedding_wo_time(x, conv_weight, *, input_dtype=jnp.bfloat16,
                           out_dtype=jnp.bfloat16, batch_rows_per_block=None):
    """
    x           : [B, L, C_in]       f32
    conv_weight : [d_model, c_in, 3] (PyTorch Conv1d layout) f32
    input_dtype : dtype of the matmul operands (bf16 default: halves the x3/w3
                  HBM read; MXU takes bf16 natively on all generations).
    out_dtype   : dtype of the stored output (bf16 default: the output write is
                  the dominant HBM term). Accumulation / pe-add stay f32.
    returns     : [B, L, d_model] in out_dtype
    """
    B, L, C = x.shape
    D = conv_weight.shape[0]

    # Fused circular conv (k=3, circular padding=1, no bias) as ONE matmul:
    # y[b,t] = x[b,(t-1)%L] @ W[:,:,0].T + x[b,t] @ W[:,:,1].T + x[b,(t+1)%L] @ W[:,:,2].T
    x_prev = jnp.roll(x, 1, axis=1)
    x_next = jnp.roll(x, -1, axis=1)
    x3 = jnp.concatenate([x_prev, x, x_next], axis=-1).astype(input_dtype)   # [B, L, 3C]
    w3 = jnp.transpose(conv_weight, (2, 1, 0)).reshape(3 * C, D).astype(input_dtype)

    pe = make_positional_encoding(L, D)                                      # [L, D] f32

    out_itemsize = jnp.dtype(out_dtype).itemsize
    b_t = _choose_batch_rows(B, L, D, out_itemsize, batch_rows_per_block)
    grid = (B // b_t,)

    out = pl.pallas_call(
        data_embedding_kernel,
        out_shape=jax.ShapeDtypeStruct((B, L, D), out_dtype),
        grid_spec=pltpu.PrefetchScalarGridSpec(
            num_scalar_prefetch=0,
            grid=grid,
            in_specs=[
                # Block boundaries are batch boundaries, so circularity (already
                # folded into x3) never crosses a tile edge.
                pl.BlockSpec((b_t, L, 3 * C), lambda j: (j, 0, 0)),
                # Grid-invariant operands: constant index map -> DMA'd once,
                # kept VMEM-resident across all grid steps.
                pl.BlockSpec((3 * C, D), lambda j: (0, 0)),
                pl.BlockSpec((L, D), lambda j: (0, 0)),
            ],
            out_specs=pl.BlockSpec((b_t, L, D), lambda j: (j, 0, 0)),
        ),
        compiler_params=pltpu.CompilerParams(
            dimension_semantics=("parallel",),
            vmem_limit_bytes=48 * 1024 * 1024,
        ),
    )(x3, w3, pe)
    return out


def reference_data_embedding(x, conv_weight, input_dtype=jnp.float32):
    """Pure-JAX reference (optionally with bf16-rounded operands), f32 output."""
    def cast(a):
        return a.astype(input_dtype).astype(jnp.float32)

    x_prev = jnp.roll(x, 1, axis=1)
    x_next = jnp.roll(x, -1, axis=1)
    w = jnp.transpose(conv_weight, (2, 1, 0))          # [3, C, D]
    y = (cast(x_prev) @ cast(w[0])) + (cast(x) @ cast(w[1])) + (cast(x_next) @ cast(w[2]))
    pe = make_positional_encoding(x.shape[1], conv_weight.shape[0])
    return y + pe[None]


if __name__ == "__main__":
    key = jax.random.PRNGKey(0)
    k_x, k_w = jax.random.split(key)

    B, L, C_IN, D_MODEL = 2, 8, 4, 32
    x = jax.random.normal(k_x, (B, L, C_IN), dtype=jnp.float32)
    conv_weight = init_token_conv_weight(k_w, C_IN, D_MODEL, kernel_size=3)

    # Exact path (f32 operands, f32 output); 1 batch row per block -> 2 grid steps.
    out_f32 = data_embedding_wo_time(x, conv_weight,
                                     input_dtype=jnp.float32,
                                     out_dtype=jnp.float32,
                                     batch_rows_per_block=1)
    out_f32 = jax.block_until_ready(out_f32)
    ref = reference_data_embedding(x, conv_weight)
    assert out_f32.shape == (B, L, D_MODEL)
    assert jnp.allclose(out_f32, ref, atol=1e-5, rtol=1e-5), "f32 mismatch vs reference"

    # Default bandwidth-optimized path (bf16 operands + bf16 output, f32 accumulation).
    out_bf16 = data_embedding_wo_time(x, conv_weight)
    out_bf16 = jax.block_until_ready(out_bf16)
    ref_bf16 = reference_data_embedding(x, conv_weight, input_dtype=jnp.bfloat16)
    assert out_bf16.shape == (B, L, D_MODEL)
    assert out_bf16.dtype == jnp.bfloat16
    assert jnp.allclose(out_bf16.astype(jnp.float32), ref_bf16,
                        atol=6e-2, rtol=6e-2), "bf16 mismatch vs reference"

    print("KERNEL_OK")
</pallas_src>

<mosaic_0001>
module attributes {stable_mosaic.version = 11 : i64} {
  func.func @data_embedding_kernel(%arg0: i32, %arg1: memref<1x8x12xf32, #tpu.memory_space<vmem>>, %arg2: memref<12x32xf32, #tpu.memory_space<vmem>>, %arg3: memref<8x32xf32, #tpu.memory_space<vmem>>, %arg4: memref<1x8x32xf32, #tpu.memory_space<vmem>>) attributes {dimension_semantics = [#tpu.dimension_semantics<parallel>], iteration_bounds = array<i64: 2>, scalar_prefetch = 0 : i64, scratch_operands = 0 : i64, tpu.core_type = #tpu.core_type<tc>, window_params = [{transform_indices = @transform_0, window_bounds = array<i64: 1, 8, 12>}, {pipeline_mode = #tpu.pipeline_mode<synchronous>, transform_indices = @transform_1, window_bounds = array<i64: 12, 32>}, {pipeline_mode = #tpu.pipeline_mode<synchronous>, transform_indices = @transform_2, window_bounds = array<i64: 8, 32>}, {transform_indices = @transform_3, window_bounds = array<i64: 1, 8, 32>}]} {
    %c0 = arith.constant 0 : index
    %c0_0 = arith.constant 0 : index
    %0 = vector.load %arg2[%c0, %c0_0] : memref<12x32xf32, #tpu.memory_space<vmem>>, vector<12x32xf32>
    %c0_1 = arith.constant 0 : index
    %c0_2 = arith.constant 0 : index
    %1 = vector.load %arg3[%c0_1, %c0_2] : memref<8x32xf32, #tpu.memory_space<vmem>>, vector<8x32xf32>
    %c0_i32 = arith.constant 0 : i32
    %c1_i32 = arith.constant 1 : i32
    %2 = arith.muli %c0_i32, %c1_i32 : i32
    %c0_i32_3 = arith.constant 0 : i32
    %3 = arith.addi %c0_i32_3, %2 : i32
    %4 = arith.index_cast %3 : i32 to index
    %c0_4 = arith.constant 0 : index
    %c0_5 = arith.constant 0 : index
    %5 = vector.load %arg1[%4, %c0_4, %c0_5] : memref<1x8x12xf32, #tpu.memory_space<vmem>>, vector<1x8x12xf32>
    %6 = vector.shape_cast %5 : vector<1x8x12xf32> to vector<8x12xf32>
    %cst = arith.constant dense<0.000000e+00> : vector<8x32xf32>
    %7 = tpu.matmul %6, %0, %cst {dimension_numbers = #tpu.dot_dimension_numbers<[1], [0], [0], [1], [0, 0, 1, 1], [], []>} : vector<8x12xf32>, vector<12x32xf32>, vector<8x32xf32> -> vector<8x32xf32>
    %8 = arith.addf %7, %1 : vector<8x32xf32>
    %9 = arith.index_cast %3 : i32 to index
    %c0_6 = arith.constant 0 : index
    %c0_7 = arith.constant 0 : index
    %10 = vector.load %arg4[%9, %c0_6, %c0_7] : memref<1x8x32xf32, #tpu.memory_space<vmem>>, vector<1x8x32xf32>
    %11 = vector.shape_cast %10 : vector<1x8x32xf32> to vector<8x32xf32>
    %12 = vector.shape_cast %8 : vector<8x32xf32> to vector<1x8x32xf32>
    tpu.vector_store %arg4[%9, %c0_6, %c0_7], %12 {strides = array<i32>} : memref<1x8x32xf32, #tpu.memory_space<vmem>>, vector<1x8x32xf32>,
    %c1_i32_8 = arith.constant 1 : i32
    return
  }
  func.func @transform_0(%arg0: i32) -> (i32, i32, i32) {
    %c0_i32 = arith.constant 0 : i32
    %c0_i32_0 = arith.constant 0 : i32
    %c0_i32_1 = arith.constant 0 : i32
    return %arg0, %c0_i32, %c0_i32_0 : i32, i32, i32
  }
  func.func @transform_1(%arg0: i32) -> (i32, i32) {
    %c0_i32 = arith.constant 0 : i32
    %c0_i32_0 = arith.constant 0 : i32
    %c0_i32_1 = arith.constant 0 : i32
    return %c0_i32, %c0_i32_0 : i32, i32
  }
  func.func @transform_2(%arg0: i32) -> (i32, i32) {
    %c0_i32 = arith.constant 0 : i32
    %c0_i32_0 = arith.constant 0 : i32
    %c0_i32_1 = arith.constant 0 : i32
    return %c0_i32, %c0_i32_0 : i32, i32
  }
  func.func @transform_3(%arg0: i32) -> (i32, i32, i32) {
    %c0_i32 = arith.constant 0 : i32
    %c0_i32_0 = arith.constant 0 : i32
    %c0_i32_1 = arith.constant 0 : i32
    return %arg0, %c0_i32, %c0_i32_0 : i32, i32, i32
  }
}

</mosaic_0001>

<bundles_post_ra>
// kernel: tpu_custom_call.1
= control target key start
LH: loop header
LB: loop body
LE: loop exit
PB: predicated region body
PF: predicated region fallthrough
CT: control target
= control target key end

     0   :  { %8 = vsyncpa [#allocation3], 0  ;;  %s776_s0 = inlined_call_operand.hbm [shape: f32[2,8,12], index: 0, kind: input, shape index: {}]   ;;  %s777_s1 = inlined_call_operand.hbm [shape: f32[12,32], index: 1, kind: input, shape index: {}]   ;;  %s778_s2 = inlined_call_operand.hbm [shape: f32[8,32], index: 2, kind: input, shape index: {}]   ;;  %s779_s3 = inlined_call_operand.hbm [shape: f32[2,8,32], index: 3, kind: output, shape index: {}]  }
   0x1   :  { %10 = vsyncpa [#allocation3 + $0x1], 0 }
   0x2   :  { %11 = vsyncpa [#allocation6], 0 }
   0x3   :  { %12 = vsyncpa [#allocation4], 0 }
   0x4   :  { %14 = vsyncpa [#allocation4 + $0x1], 0  ;;  %s631_s12 = smov 0   ;;  %s633_s13 = smov 0  }
   0x5   :  { %s635_s14 = smov 0   ;;  %s637_s15 = smov 0  }
   0x6 LB: > { %s130_s18 = sshll.u32 %s777_s1, 4  ;;  %s655_s19 = sadd.s32 4294967295, %s605_s15   ;;  %s605_s15 = sphi %s637_s15, %s790_s15   ;;  %s601_s14 = sphi %s635_s14, %s789_s14   ;;  %s597_s13 = sphi %s633_s13, %s788_s13   ;;  %s593_s12 = sphi %s631_s12, %s787_s12   ;;  %s131_s18 = int_to_ptr.hbm [resolvable:$true] %s130_s18 }
   0x7   : > { %p359_p0 = scmp.ge.s32.totalorder %s605_s15, 1  ;;  %p41_p1 = scmp.eq.s32.totalorder %s655_s19, 0 }
   0x8   : > { %p119_p2 = scmp.lt.s32.totalorder %s605_s15, 3  ;;  %s607_s21 = smov [#allocation5]  }
   0x9   : > { %s132_s22 = sshll.u32 %s607_s21, 4  ;;  %s145_s25 = sshll.u32 %s778_s2, 4  ;;  %s133_s22 = int_to_ptr.vmem [resolvable:$true] %s132_s22  ;;  %s146_s25 = int_to_ptr.hbm [resolvable:$true] %s145_s25 }
   0xa   : > { %p660_p3 = pnand %p359_p0, %p119_p2  ;;  %s608_s26 = smov [#allocation7]  }
   0xb   : > { %s147_s27 = sshll.u32 %s608_s26, 4  ;;  %s609_s28 = smov 128   ;;  %s148_s27 = int_to_ptr.vmem [resolvable:$true] %s147_s27 }
   0xc   : > { %p388_p4 = pneg %p660_p3  ;;  %s610_s29 = smov 8  }
   0xd   : > { %s358_s30 = sadd.s32 4294967294, %s605_s15   ;;  %s674_s4 = sadd.s32 1, %s605_s15  }
   0xe   : > { %p389_p6 = pnand %p388_p4, %p41_p1  ;;  %s24_s5 = ssub.s32 %s605_s15, %s674_s4 }
   0xf   : > { %s27_s6 = sadd.s32 1, %s601_s14  ;;  %p25_p7 = scmp.eq.s32.totalorder %s24_s5, 0 }
  0x10   : > { %391 = dma.hbm_to_vmem [thread:$0]  (!%p389_p6), %s131_s18, 256, %s133_s22, [#allocation6], %s609_s28, %s609_s28, %s610_s29  }
  0x11   : > { %394 = dma.hbm_to_vmem [thread:$0]  (!%p389_p6), %s146_s25, 128, %s148_s27, [#allocation6]  }
  0x12   : > { %p34_p8 = scmp.ne.s32.totalorder %s601_s14, %s597_s13  ;;  %p35_p9 = scmp.eq.s32.totalorder %s605_s15, 0 }
  0x13   : > { %p40_p10 = scmp.ne.s32.totalorder %s597_s13, %s593_s12  ;;  %p106_p13 = scmp.eq.s32.totalorder %s655_s19, 1 }
  0x14   : > { %s685_s7 = scalar_select %p25_p7, %s601_s14, %s27_s6  }
  0x15   : > { %p687_p11 = por %p35_p9, %p34_p8  ;;  %p693_p12 = por %p41_p1, %p40_p10 }
  0x16   : > { %p112_p0 = scmp.eq.s32.totalorder %s358_s30, 1  ;;  %p405_p2 = scmp.lt.s32.totalorder %s605_s15, 2 }
  0x17   : > { %s158_s10 = sand.u32 1, %s601_s14   ;;  %p700_p4 = por %p106_p13, %p34_p8 }
  0x18   : > { %p704_p6 = por %p112_p0, %p40_p10  ;;  %s363_s17 = sshll.u32 %s158_s10, 3 }
  0x19   : > { %s364_s18 = sshll.u32 %s605_s15, 3  ;;  %s162_s24 = scalar_lea.vmem [#allocation2], %s363_s17 }
  0x1a   : > { %s166_s23 = scalar_lea.hbm %s776_s0, %s364_s18  ;;  %s170_s25 = sshll.u32 %s162_s24, 4  ;;  %s171_s25 = int_to_ptr.vmem [resolvable:$true] %s170_s25 }
  0x1b   : > { %s168_s26 = sshll.u32 %s166_s23, 4  ;;  %p714_p7 = pnand %p405_p2, %p687_p11  ;;  %s169_s26 = int_to_ptr.hbm [resolvable:$true] %s168_s26 }
  0x1c   : > { %s159_s28 = scalar_lea.sflag [#allocation3], %s158_s10  ;;  %s505_s29 = sshra.s32 %s169_s26, 4  ;;  %s506_s29 = int_to_ptr.hbm [resolvable:$true] %s505_s29 }
  0x1d   : > { %s507_s30 = scalar_lea.hbm %s506_s29, 8  ;;  %p509_p9 = pneg %p714_p7 }
  0x1e   : > { %p508_p8 = scmp.ne.s32.totalorder %s506_s29, %s507_s30  ;;  %s512_s17 = scalar_lea.hbm %s776_s0, 16 }
  0x1f   : > { %p513_p11 = scmp.lt.s32.totalorder %s506_s29, %s776_s0  ;;  %p514_p0 = scmp.lt.s32.totalorder %s512_s17, %s507_s30 }
  0x20   : > { %p510_p10 = pnand %p509_p9, %p508_p8 }
  0x21   : > { %p515_p2 = por %p514_p0, %p513_p11 }
  0x22   : > { %p511_p13 = pneg %p510_p10 }
  0x24   : > { %p516_p5 = pnand %p515_p2, %p511_p13 }
  0x26   : > { %519 = shalt.err (!%p516_p5)
}
  0x27   : > { %398 = dma.hbm_to_vmem [thread:$0]  (!%p714_p7), %s169_s26, 128, %s171_s25, %s159_s28  }
  0x28   : > { %179 = sbr.rel (%p660_p3) target bundleno = 183 (0xb7), region = 32  ;;  %s731_s10 = sand.u32 (!%p660_p3), 1, %s597_s13  }
  0x29   : > { %s366_s21 = sshll.u32 (!%p660_p3), %s731_s10, 3  ;;  %s182_s22 = scalar_lea.sflag (!%p660_p3), [#allocation3], %s731_s10 }
  0x2a   : > { %s185_s23 = scalar_lea.vmem (!%p660_p3), [#allocation2], %s366_s21 }
  0x2d   : > { %580 = dma.done.wait (%p693_p12), %s182_s22, 128  }
  0x2e   : > { %582 = vsyncadd (%p693_p12), %s182_s22, 4294967168 }
  0x2f   : > { %584 = dma.done.wait (%p41_p1), [#allocation6], 384  }
  0x30   : > { %586 = vsyncadd (%p41_p1), [#allocation6], 4294966912  ;;  %vm227_vm0 = vcmask 1043456   ;;  %v220_v0 = vld [vmem:[#allocation5 + $0x8] sm:$0xf]  ;;  %v219_v1 = vld [vmem:[#allocation5] sm:$0xff] }
  0x31   : > { %370 = vmatpush.msk.msra.mxu0 %vm227_vm0, %v220_v0  ;;  %v222_v2 = vld [vmem:[%s185_s23] sm:$0xff]  ;;  %vm223_vm1 = vcmask 97280   ;;  %s373_s20 = sshll.u32 %s655_s19, 3  ;;  %s218_s26 = scalar_lea.vmem [#allocation8], %s366_s21  ;;  %vm251_vm2 = vcmask 261120  }
  0x32   : > { %s264_s25 = scalar_lea.hbm %s779_s3, %s373_s20  ;;  %v221_v3 = vld [vmem:[#allocation7] sm:$0xff]  ;;  %s266_s27 = sshll.u32 %s218_s26, 4  ;;  %s267_s27 = int_to_ptr.vmem [resolvable:$true] %s266_s27 }
  0x33   : > { %246 = vmatpush.msra.mxu0 %v219_v1  ;;  %s268_s28 = sshll.u32 %s264_s25, 4  ;;  %s254_s29 = scalar_lea.sflag [#allocation4], %s731_s10  ;;  %s269_s28 = int_to_ptr.hbm [resolvable:$true] %s268_s28 }
  0x34   : > { %371 = vmatmul.msk.f32.vlgmr.msra.gmra.mxu0 %vm223_vm1, %v222_v2  ;;  %s549_s30 = sshra.s32 %s269_s28, 4  ;;  %s555_s17 = scalar_lea.hbm %s779_s3, 16  ;;  %s550_s30 = int_to_ptr.hbm [resolvable:$true] %s549_s30 }
  0x35   : > { %s551_s5 = scalar_lea.hbm %s550_s30, 8  ;;  %p556_p12 = scmp.lt.s32.totalorder %s550_s30, %s779_s3 }
  0x36   : > { %p552_p1 = scmp.ne.s32.totalorder %s550_s30, %s551_s5  ;;  %p557_p7 = scmp.lt.s32.totalorder %s555_s17, %s551_s5 }
  0x38   : > { %p553_p3 = pnand %p552_p1, %p700_p4  ;;  %p558_p8 = por %p557_p7, %p556_p12 }
  0x3a   : > { %p554_p5 = pneg %p553_p3 }
  0x3c   : > { %p559_p9 = pnand %p558_p8, %p554_p5 }
  0xb1   : > { %v248_v4 = vpop.f32.mrf.mxu0 }
  0xb2   : > { %v249_v5 = vadd.f32 %v248_v4, %v221_v3 }
  0xb4   : > { %252 = vst.msk [vmem:[%s218_s26] sm:$0xff] %vm251_vm2, %v249_v5 }
  0xb5   : > { %562 = shalt.err (!%p559_p9)
}
  0xb6   : > { %386 = dma.vmem_to_hbm [thread:$0]  (%p700_p4), %s267_s27, 128, %s269_s28, %s254_s29  }
  0xb7 PF: > { %s280_s10 = sand.u32 1, %s593_s12   ;;  %p786_p10 = scmp.ge.s32.totalorder %s605_s15, 2 }
  0xb8   : > { %s281_s21 = scalar_lea.sflag [#allocation4], %s280_s10 }
  0xb9   : > { %p400_p13 = pnand %p786_p10, %p704_p6 }
  0xbb   : > { %p401_p11 = pneg %p400_p13 }
  0xbd   : > { %588 = dma.done.wait (%p401_p11), %s281_s21, 128  }
  0xbe   : > { %590 = vsyncadd (%p401_p11), %s281_s21, 4294967168  ;;  %p17_p0 = scmp.ge.s32.totalorder %s674_s4, 4   ;;  %s787_s12 = smov %s597_s13 }
  0xbf   : > { %s788_s13 = smov %s601_s14  ;;  %s789_s14 = smov %s685_s7 }
  0xc0   : > { %s790_s15 = smov %s674_s4  ;;  %19 = sbr.rel (!%p17_p0) target bundleno = 6 (0x6), region = 85 }
  0xc5   :  { %287 = vsyncpa [#allocation3], 1 }
  0xc6   :  { %289 = vsyncpa [#allocation3 + $0x1], 1 }
  0xc7   :  { %290 = vsyncpa [#allocation6], 1 }
  0xc8   :  { %291 = vsyncpa [#allocation4], 1 }
  0xc9   :  { %293 = vsyncpa [#allocation4 + $0x1], 1 }

</bundles_post_ra>
